<compile_context>
chip_gen: v5e
topology: v5e:2x2
jax: 0.10.0
libtpu: 0.0.40
codegen_flags: <defaults>
</compile_context>

<pallas_src>
import jax
import jax.numpy as jnp
from jax.experimental import pallas as pl
from jax.experimental.pallas import tpu as pltpu

HIGH_BOUND = 2.0
LOW_BOUND = -2.0

# Batch-tile cap (lanes).  Double-buffered x + out tiles cost ~128*bt bytes of
# VMEM -> ~8.4 MiB at 65536: fits v5e's 16 MiB scoped default, v6e's 32 MiB,
# and v7x's 64 MiB physical VMEM without touching vmem_limit_bytes.
_MAX_BLOCK_B = 65536


def _round_up(n, m):
    return ((n + m - 1) // m) * m


def _cdiv(a, b):
    return (a + b - 1) // b


def _actor_kernel(x_ref, w1_ref, b1_ref, w2_ref, b2_ref,
                  w3_ref, b3_ref, w4_ref, b4_ref, o_ref):
    # x_ref: [state_size, bt]   (features on sublanes, batch on lanes)
    h = x_ref[...]

    h = jnp.maximum(
        jnp.dot(w1_ref[...], h, preferred_element_type=jnp.float32) + b1_ref[...],
        0.0)
    h = jnp.maximum(
        jnp.dot(w2_ref[...], h, preferred_element_type=jnp.float32) + b2_ref[...],
        0.0)
    h = jnp.maximum(
        jnp.dot(w3_ref[...], h, preferred_element_type=jnp.float32) + b3_ref[...],
        0.0)
    y = jnp.dot(w4_ref[...], h, preferred_element_type=jnp.float32) + b4_ref[...]

    # Exact sigmoid (the approximate reciprocal previously blew the tolerance).
    s = 1.0 / (1.0 + jnp.exp(-y))
    o_ref[...] = (s * (HIGH_BOUND - LOW_BOUND) + LOW_BOUND).astype(o_ref.dtype)


def dqn_actor_forward_feature_major(xT, params, *, block_b=_MAX_BLOCK_B):
    """Core entry point.  xT: [state_size, B] f32 (feature-major, batch on lanes).

    Returns [1, B] f32.  Callers that already hold feature-major activations
    avoid any host-side transpose.
    """
    S, B = xT.shape

    # Tile policy: multiple of 128 lanes, capped for VMEM portability, and
    # split into >=2 balanced tiles when possible so the "parallel" axis can
    # feed both TensorCores on v7x.
    block_b = min(max(_round_up(block_b, 128), 128), _MAX_BLOCK_B)
    bp_min = _round_up(max(B, 1), 128)
    nb = _cdiv(bp_min, block_b)
    if bp_min >= 256:
        nb = max(nb, 2)
    bt = _round_up(_cdiv(bp_min, nb), 128)
    Bp = nb * bt

    if Bp != B:
        xT = jnp.pad(xT, ((0, 0), (0, Bp - B)))

    w1, b1 = params["w1"], params["b1"].reshape(-1, 1)
    w2, b2 = params["w2"], params["b2"].reshape(-1, 1)
    w3, b3 = params["w3"], params["b3"].reshape(-1, 1)
    w4, b4 = params["w4"], params["b4"].reshape(-1, 1)

    # Constant block index -> weights/biases stay VMEM-resident across steps.
    const_spec = lambda a: pl.BlockSpec(a.shape, lambda i: (0, 0))

    out = pl.pallas_call(
        _actor_kernel,
        out_shape=jax.ShapeDtypeStruct((1, Bp), jnp.float32),
        grid_spec=pltpu.PrefetchScalarGridSpec(
            num_scalar_prefetch=0,
            grid=(nb,),
            in_specs=[
                pl.BlockSpec((S, bt), lambda i: (0, i)),   # x tile (batch-sliced)
                const_spec(w1), const_spec(b1),
                const_spec(w2), const_spec(b2),
                const_spec(w3), const_spec(b3),
                const_spec(w4), const_spec(b4),
            ],
            out_specs=pl.BlockSpec((1, bt), lambda i: (0, i)),   # lane-dense output
        ),
        compiler_params=pltpu.CompilerParams(
            dimension_semantics=("parallel",)),
    )(xT, w1, b1, w2, b2, w3, b3, w4, b4)

    return out[:, :B]


def dqn_actor_forward(x, params, *, block_b=_MAX_BLOCK_B):
    """PyTorch-parity wrapper: x [B, state_size] f32 -> [B, 1] f32."""
    B = x.shape[0]
    out = dqn_actor_forward_feature_major(x.T, params, block_b=block_b)
    return out.reshape(B, 1)


def init_params(key, state_size):
    """nn.Linear-style init: w ~ U(-1/sqrt(fan_in), 1/sqrt(fan_in)), PyTorch layout [out, in]."""
    dims = [(state_size, 8), (8, 8), (8, 8), (8, 1)]
    params = {}
    for i, (fan_in, fan_out) in enumerate(dims, start=1):
        key, kw, kb = jax.random.split(key, 3)
        bound = 1.0 / jnp.sqrt(jnp.float32(fan_in))
        params[f"w{i}"] = jax.random.uniform(
            kw, (fan_out, fan_in), jnp.float32, -bound, bound)
        params[f"b{i}"] = jax.random.uniform(
            kb, (fan_out,), jnp.float32, -bound, bound)
    return params


def _reference(x, p):
    # Full-f32 reference (precision="highest" avoids XLA's default bf16-pass
    # matmuls so the reference itself is not the imprecise side).
    mm = lambda a, b: jnp.matmul(a, b, precision=jax.lax.Precision.HIGHEST)
    h = jax.nn.relu(mm(x, p["w1"].T) + p["b1"])
    h = jax.nn.relu(mm(h, p["w2"].T) + p["b2"])
    h = jax.nn.relu(mm(h, p["w3"].T) + p["b3"])
    y = mm(h, p["w4"].T) + p["b4"]
    return jax.nn.sigmoid(y) * (HIGH_BOUND - LOW_BOUND) + LOW_BOUND


def _snap_bf16(t):
    # Snap test data to the bf16 grid: the first-layer products are then exact
    # regardless of how any given matmul path (bf16-pass or full f32) rounds
    # its operands, which removes the dominant source of cross-path mismatch.
    return t.astype(jnp.bfloat16).astype(jnp.float32)


if __name__ == "__main__":
    key = jax.random.PRNGKey(0)
    key, kx1, kx2 = jax.random.split(key, 3)

    state_size = 3  # pendulum observation: (cos theta, sin theta, theta_dot)
    params = {k: _snap_bf16(v) for k, v in init_params(key, state_size).items()}

    # Tolerance budget: with the exact sigmoid the typical deviation is ~1e-6;
    # 1e-2 only covers possible bf16-pass emulation of the f32 dots inside the
    # kernel vs. the full-f32 reference (any real bug is O(0.1-1)).
    TOL = 1e-2

    # Small batch (pads to one 128-wide tile).
    x_small = _snap_bf16(jax.random.normal(kx1, (8, state_size), jnp.float32))
    out_small = jax.block_until_ready(dqn_actor_forward(x_small, params))
    assert out_small.shape == (8, 1)
    err_small = float(jnp.max(jnp.abs(out_small - _reference(x_small, params))))
    assert err_small <= TOL, err_small

    # Non-aligned batch, explicit small tile -> 3 grid steps.
    x_big = _snap_bf16(jax.random.normal(kx2, (300, state_size), jnp.float32))
    r_big = _reference(x_big, params)
    out_big = jax.block_until_ready(dqn_actor_forward(x_big, params, block_b=128))
    assert out_big.shape == (300, 1)
    err_big = float(jnp.max(jnp.abs(out_big - r_big)))
    assert err_big <= TOL, err_big

    # Same batch through the default tile policy (nb>=2 heuristic -> 2 tiles of 256).
    out_big2 = jax.block_until_ready(dqn_actor_forward(x_big, params))
    assert out_big2.shape == (300, 1)
    err_big2 = float(jnp.max(jnp.abs(out_big2 - r_big)))
    assert err_big2 <= TOL, err_big2

    # Feature-major entry point (no host-side transpose), returns [1, B].
    out_fm = jax.block_until_ready(
        dqn_actor_forward_feature_major(x_big.T, params))
    assert out_fm.shape == (1, 300)
    err_fm = float(jnp.max(jnp.abs(out_fm.reshape(300, 1) - r_big)))
    assert err_fm <= TOL, err_fm

    print("KERNEL_OK")
</pallas_src>

<mosaic_0001>
module attributes {stable_mosaic.version = 11 : i64} {
  func.func @_actor_kernel(%arg0: i32, %arg1: memref<3x128xf32, #tpu.memory_space<vmem>>, %arg2: memref<8x3xf32, #tpu.memory_space<vmem>>, %arg3: memref<8x1xf32, #tpu.memory_space<vmem>>, %arg4: memref<8x8xf32, #tpu.memory_space<vmem>>, %arg5: memref<8x1xf32, #tpu.memory_space<vmem>>, %arg6: memref<8x8xf32, #tpu.memory_space<vmem>>, %arg7: memref<8x1xf32, #tpu.memory_space<vmem>>, %arg8: memref<1x8xf32, #tpu.memory_space<vmem>>, %arg9: memref<1x1xf32, #tpu.memory_space<vmem>>, %arg10: memref<1x128xf32, #tpu.memory_space<vmem>>) attributes {dimension_semantics = [#tpu.dimension_semantics<parallel>], iteration_bounds = array<i64: 1>, scalar_prefetch = 0 : i64, scratch_operands = 0 : i64, tpu.core_type = #tpu.core_type<tc>, window_params = [{transform_indices = @transform_0, window_bounds = array<i64: 3, 128>}, {pipeline_mode = #tpu.pipeline_mode<synchronous>, transform_indices = @transform_1, window_bounds = array<i64: 8, 3>}, {pipeline_mode = #tpu.pipeline_mode<synchronous>, transform_indices = @transform_2, window_bounds = array<i64: 8, 1>}, {pipeline_mode = #tpu.pipeline_mode<synchronous>, transform_indices = @transform_3, window_bounds = array<i64: 8, 8>}, {pipeline_mode = #tpu.pipeline_mode<synchronous>, transform_indices = @transform_4, window_bounds = array<i64: 8, 1>}, {pipeline_mode = #tpu.pipeline_mode<synchronous>, transform_indices = @transform_5, window_bounds = array<i64: 8, 8>}, {pipeline_mode = #tpu.pipeline_mode<synchronous>, transform_indices = @transform_6, window_bounds = array<i64: 8, 1>}, {pipeline_mode = #tpu.pipeline_mode<synchronous>, transform_indices = @transform_7, window_bounds = array<i64: 1, 8>}, {pipeline_mode = #tpu.pipeline_mode<synchronous>, transform_indices = @transform_8, window_bounds = array<i64: 1, 1>}, {transform_indices = @transform_9, window_bounds = array<i64: 1, 128>}]} {
    %c0 = arith.constant 0 : index
    %c0_0 = arith.constant 0 : index
    %0 = vector.load %arg1[%c0, %c0_0] : memref<3x128xf32, #tpu.memory_space<vmem>>, vector<3x128xf32>
    %c0_1 = arith.constant 0 : index
    %c0_2 = arith.constant 0 : index
    %1 = vector.load %arg2[%c0_1, %c0_2] : memref<8x3xf32, #tpu.memory_space<vmem>>, vector<8x3xf32>
    %cst = arith.constant dense<0.000000e+00> : vector<8x128xf32>
    %2 = tpu.matmul %1, %0, %cst {dimension_numbers = #tpu.dot_dimension_numbers<[1], [0], [0], [1], [0, 0, 1, 1], [], []>} : vector<8x3xf32>, vector<3x128xf32>, vector<8x128xf32> -> vector<8x128xf32>
    %c0_3 = arith.constant 0 : index
    %c0_4 = arith.constant 0 : index
    %3 = vector.load %arg3[%c0_3, %c0_4] : memref<8x1xf32, #tpu.memory_space<vmem>>, vector<8x1xf32>
    %4 = vector.broadcast %3 : vector<8x1xf32> to vector<8x128xf32>
    %5 = arith.addf %2, %4 : vector<8x128xf32>
    %cst_5 = arith.constant 0.000000e+00 : f32
    %6 = vector.broadcast %cst_5 : f32 to vector<8x128xf32>
    %7 = arith.maximumf %5, %6 : vector<8x128xf32>
    %c0_6 = arith.constant 0 : index
    %c0_7 = arith.constant 0 : index
    %8 = vector.load %arg4[%c0_6, %c0_7] : memref<8x8xf32, #tpu.memory_space<vmem>>, vector<8x8xf32>
    %cst_8 = arith.constant dense<0.000000e+00> : vector<8x128xf32>
    %9 = tpu.matmul %8, %7, %cst_8 {dimension_numbers = #tpu.dot_dimension_numbers<[1], [0], [0], [1], [0, 0, 1, 1], [], []>} : vector<8x8xf32>, vector<8x128xf32>, vector<8x128xf32> -> vector<8x128xf32>
    %c0_9 = arith.constant 0 : index
    %c0_10 = arith.constant 0 : index
    %10 = vector.load %arg5[%c0_9, %c0_10] : memref<8x1xf32, #tpu.memory_space<vmem>>, vector<8x1xf32>
    %11 = vector.broadcast %10 : vector<8x1xf32> to vector<8x128xf32>
    %12 = arith.addf %9, %11 : vector<8x128xf32>
    %cst_11 = arith.constant 0.000000e+00 : f32
    %13 = vector.broadcast %cst_11 : f32 to vector<8x128xf32>
    %14 = arith.maximumf %12, %13 : vector<8x128xf32>
    %c0_12 = arith.constant 0 : index
    %c0_13 = arith.constant 0 : index
    %15 = vector.load %arg6[%c0_12, %c0_13] : memref<8x8xf32, #tpu.memory_space<vmem>>, vector<8x8xf32>
    %cst_14 = arith.constant dense<0.000000e+00> : vector<8x128xf32>
    %16 = tpu.matmul %15, %14, %cst_14 {dimension_numbers = #tpu.dot_dimension_numbers<[1], [0], [0], [1], [0, 0, 1, 1], [], []>} : vector<8x8xf32>, vector<8x128xf32>, vector<8x128xf32> -> vector<8x128xf32>
    %c0_15 = arith.constant 0 : index
    %c0_16 = arith.constant 0 : index
    %17 = vector.load %arg7[%c0_15, %c0_16] : memref<8x1xf32, #tpu.memory_space<vmem>>, vector<8x1xf32>
    %18 = vector.broadcast %17 : vector<8x1xf32> to vector<8x128xf32>
    %19 = arith.addf %16, %18 : vector<8x128xf32>
    %cst_17 = arith.constant 0.000000e+00 : f32
    %20 = vector.broadcast %cst_17 : f32 to vector<8x128xf32>
    %21 = arith.maximumf %19, %20 : vector<8x128xf32>
    %c0_18 = arith.constant 0 : index
    %c0_19 = arith.constant 0 : index
    %22 = vector.load %arg8[%c0_18, %c0_19] : memref<1x8xf32, #tpu.memory_space<vmem>>, vector<1x8xf32>
    %cst_20 = arith.constant dense<0.000000e+00> : vector<1x128xf32>
    %23 = tpu.matmul %22, %21, %cst_20 {dimension_numbers = #tpu.dot_dimension_numbers<[1], [0], [0], [1], [0, 0, 1, 1], [], []>} : vector<1x8xf32>, vector<8x128xf32>, vector<1x128xf32> -> vector<1x128xf32>
    %c0_21 = arith.constant 0 : index
    %c0_22 = arith.constant 0 : index
    %24 = vector.load %arg9[%c0_21, %c0_22] : memref<1x1xf32, #tpu.memory_space<vmem>>, vector<1x1xf32>
    %25 = vector.broadcast %24 : vector<1x1xf32> to vector<1x128xf32>
    %26 = arith.addf %23, %25 : vector<1x128xf32>
    %cst_23 = arith.constant 0.000000e+00 : f32
    %27 = vector.broadcast %cst_23 : f32 to vector<1x128xf32>
    %28 = arith.subf %27, %26 : vector<1x128xf32>
    %29 = math.exp %28 : vector<1x128xf32>
    %cst_24 = arith.constant 1.000000e+00 : f32
    %30 = vector.broadcast %cst_24 : f32 to vector<1x128xf32>
    %31 = arith.addf %30, %29 : vector<1x128xf32>
    %cst_25 = arith.constant 1.000000e+00 : f32
    %32 = vector.broadcast %cst_25 : f32 to vector<1x128xf32>
    %33 = arith.divf %32, %31 : vector<1x128xf32>
    %cst_26 = arith.constant 4.000000e+00 : f32
    %34 = vector.broadcast %cst_26 : f32 to vector<1x128xf32>
    %35 = arith.mulf %33, %34 : vector<1x128xf32>
    %cst_27 = arith.constant -2.000000e+00 : f32
    %36 = vector.broadcast %cst_27 : f32 to vector<1x128xf32>
    %37 = arith.addf %35, %36 : vector<1x128xf32>
    %c0_28 = arith.constant 0 : index
    %c0_29 = arith.constant 0 : index
    %38 = vector.load %arg10[%c0_28, %c0_29] : memref<1x128xf32, #tpu.memory_space<vmem>>, vector<1x128xf32>
    tpu.vector_store %arg10[%c0_28, %c0_29], %37 {strides = array<i32>} : memref<1x128xf32, #tpu.memory_space<vmem>>, vector<1x128xf32>,
    return
  }
  func.func @transform_0(%arg0: i32) -> (i32, i32) {
    %c0_i32 = arith.constant 0 : i32
    %c0_i32_0 = arith.constant 0 : i32
    return %c0_i32, %arg0 : i32, i32
  }
  func.func @transform_1(%arg0: i32) -> (i32, i32) {
    %c0_i32 = arith.constant 0 : i32
    %c0_i32_0 = arith.constant 0 : i32
    %c0_i32_1 = arith.constant 0 : i32
    return %c0_i32, %c0_i32_0 : i32, i32
  }
  func.func @transform_2(%arg0: i32) -> (i32, i32) {
    %c0_i32 = arith.constant 0 : i32
    %c0_i32_0 = arith.constant 0 : i32
    %c0_i32_1 = arith.constant 0 : i32
    return %c0_i32, %c0_i32_0 : i32, i32
  }
  func.func @transform_3(%arg0: i32) -> (i32, i32) {
    %c0_i32 = arith.constant 0 : i32
    %c0_i32_0 = arith.constant 0 : i32
    %c0_i32_1 = arith.constant 0 : i32
    return %c0_i32, %c0_i32_0 : i32, i32
  }
  func.func @transform_4(%arg0: i32) -> (i32, i32) {
    %c0_i32 = arith.constant 0 : i32
    %c0_i32_0 = arith.constant 0 : i32
    %c0_i32_1 = arith.constant 0 : i32
    return %c0_i32, %c0_i32_0 : i32, i32
  }
  func.func @transform_5(%arg0: i32) -> (i32, i32) {
    %c0_i32 = arith.constant 0 : i32
    %c0_i32_0 = arith.constant 0 : i32
    %c0_i32_1 = arith.constant 0 : i32
    return %c0_i32, %c0_i32_0 : i32, i32
  }
  func.func @transform_6(%arg0: i32) -> (i32, i32) {
    %c0_i32 = arith.constant 0 : i32
    %c0_i32_0 = arith.constant 0 : i32
    %c0_i32_1 = arith.constant 0 : i32
    return %c0_i32, %c0_i32_0 : i32, i32
  }
  func.func @transform_7(%arg0: i32) -> (i32, i32) {
    %c0_i32 = arith.constant 0 : i32
    %c0_i32_0 = arith.constant 0 : i32
    %c0_i32_1 = arith.constant 0 : i32
    return %c0_i32, %c0_i32_0 : i32, i32
  }
  func.func @transform_8(%arg0: i32) -> (i32, i32) {
    %c0_i32 = arith.constant 0 : i32
    %c0_i32_0 = arith.constant 0 : i32
    %c0_i32_1 = arith.constant 0 : i32
    return %c0_i32, %c0_i32_0 : i32, i32
  }
  func.func @transform_9(%arg0: i32) -> (i32, i32) {
    %c0_i32 = arith.constant 0 : i32
    %c0_i32_0 = arith.constant 0 : i32
    return %c0_i32, %arg0 : i32, i32
  }
}

</mosaic_0001>

<bundles_post_ra>
// kernel: tpu_custom_call.1
= control target key start
LH: loop header
LB: loop body
LE: loop exit
PB: predicated region body
PF: predicated region fallthrough
CT: control target
= control target key end

     0   :  { %s328_s0 = inlined_call_operand.vmem [shape: f32[3,128], index: 0, kind: input, shape index: {}]   ;;  %s329_s1 = inlined_call_operand.vmem [shape: f32[8,3], index: 1, kind: input, shape index: {}]   ;;  %s330_s2 = inlined_call_operand.vmem [shape: f32[8,1], index: 2, kind: input, shape index: {}]   ;;  %s331_s3 = inlined_call_operand.vmem [shape: f32[8,8], index: 3, kind: input, shape index: {}]   ;;  %s332_s4 = inlined_call_operand.vmem [shape: f32[8,1], index: 4, kind: input, shape index: {}]   ;;  %s333_s5 = inlined_call_operand.vmem [shape: f32[8,8], index: 5, kind: input, shape index: {}]   ;;  %s334_s6 = inlined_call_operand.vmem [shape: f32[8,1], index: 6, kind: input, shape index: {}]   ;;  %s335_s7 = inlined_call_operand.vmem [shape: f32[1,8], index: 7, kind: input, shape index: {}]   ;;  %s336_s8 = inlined_call_operand.<no memory space> [shape: f32[1,1], index: 8, kind: input, shape index: {}]   ;;  %s337_s9 = inlined_call_operand.hbm [shape: f32[1,128], index: 9, kind: output, shape index: {}]  }
   0x1   :  { %v14_v0 = vstv %s336_s8 }
   0x2   :  { %15 = vst [vmem:[#allocation2] sm:$0x1] %v14_v0 }
   0x3   :  { %v35_v1 = vld [vmem:[%s328_s0] sm:$0x7]  ;;  %vm47_vm0 = vcmask 1042432   ;;  %vm43_vm1 = vcmask 23552   ;;  %v243_v3 = vmov 0  }
   0x4   :  { %v36_v2 = vld [vmem:[%s329_s1] sm:$0xff]  ;;  %204 = vmatpush.msk.msra.mxu0 %vm47_vm0, %v35_v1  ;;  %211 = vset.pattern.permute.xlu0 %v243_v3 }
   0x5   :  { %v37_v4 = vld [vmem:[%s330_s2] sm:$0xff] }
   0x6   :  { %16 = vsyncpa [#allocation4], 0  ;;  %205 = vmatmul.msk.f32.vlgmr.msra.gmra.mxu0 %vm43_vm1, %v36_v2  ;;  %40 = vperm.xlu0 %211, %v37_v4   ;;  %v73_v5 = vld [vmem:[%s332_s4] sm:$0xff]  ;;  %vm79_vm2 = vcmask 64512   ;;  %s195_s22 = sshll.u32 %s337_s9, 4  ;;  %s196_s22 = int_to_ptr.hbm [resolvable:$true] %s195_s22 }
   0x7   :  { %212 = vset.pattern.permute.xlu1 %v243_v3  ;;  %v72_v10 = vld [vmem:[%s331_s3] sm:$0xff] }
   0x8   :  { %v105_v11 = vld [vmem:[%s334_s6] sm:$0xff] }
   0x9   :  { %108 = vperm.xlu1 %212, %v105_v11   ;;  %v136_v12 = vld [vmem:[#allocation2] sm:$0x1] }
   0xa   :  { %v104_v17 = vld [vmem:[%s333_s5] sm:$0xff]  ;;  %s244_s5 = smov [#allocation3]  }
   0xb   :  { %v135_v22 = vld [vmem:[%s335_s7] sm:$0x1]  ;;  %s193_s7 = sshll.u32 %s244_s5, 4  ;;  %s194_s7 = int_to_ptr.vmem [resolvable:$true] %s193_s7 }
   0xe   :  { %76 = vperm.xlu0 %211, %v73_v5  }
  0x11   :  { %139 = vperm.xlu1 %212, %v136_v12  }
  0x78   :  { %v41_v6 = vpop.permute.xlu0 %40 }
  0x7b   :  { %v109_v18 = vpop.permute.xlu1 %108 }
  0x80   :  { %v77_v13 = vpop.permute.xlu0 %76 }
  0x83   :  { %v68_v7 = vpop.f32.mrf.mxu0  ;;  %v140_v23 = vpop.permute.xlu1 %139 }
  0x84   :  { %v69_v8 = vadd.f32 %v68_v7, %v41_v6  ;;  %v142_v24 = vperm.slane %v140_v23, 0 }
  0x86   :  { %v71_v9 = vmax.f32 %v69_v8, 0.0 }
  0x88   :  { %98 = vmatpush.msra.mxu1 %v71_v9 }
  0x89   :  { %206 = vmatmul.msk.f32.vlgmr.msra.gmra.mxu1 %vm79_vm2, %v72_v10 }
 0x106   :  { %v100_v14 = vpop.f32.mrf.mxu1 }
 0x107   :  { %v101_v15 = vadd.f32 %v100_v14, %v77_v13 }
 0x109   :  { %v103_v16 = vmax.f32 %v101_v15, 0.0 }
 0x10b   :  { %129 = vmatpush.msra.mxu2 %v103_v16 }
 0x10c   :  { %207 = vmatmul.msk.f32.vlgmr.msra.gmra.mxu2 %vm79_vm2, %v104_v17 }
 0x18f   :  { %v131_v19 = vpop.f32.mrf.mxu2 }
 0x190   :  { %v132_v20 = vadd.f32 %v131_v19, %v109_v18 }
 0x192   :  { %v134_v21 = vmax.f32 %v132_v20, 0.0 }
 0x194   :  { %161 = vmatpush.msra.mxu3 %v134_v21 }
 0x195   :  { %208 = vmatmul.msk.f32.vlgmr.msra.gmra.mxu3 %vm79_vm2, %v135_v22 }
 0x218   :  { %v163_v25 = vpop.f32.mrf.mxu3 }
 0x219   :  { %v164_v26 = vadd.f32 %v163_v25, %v142_v24 }
 0x21b   :  { %v166_v27 = vsub.f32 0.0, %v164_v26 }
 0x21d   :  { %v167_v28 = vmul.f32 1.442695, %v166_v27 }
 0x21f   :  { %213 = vpow2.f32 %v167_v28 }
 0x225   :  { %v214_v29 = vpop.eup %213 }
 0x226   :  { %v169_v30 = vadd.f32 1.0, %v214_v29 }
 0x228   :  { %215 = vrcp.f32 %v169_v30  ;;  %v181_v34 = vand.u32 2147483648, %v169_v30  ;;  %v179_v36 = vand.u32 2147483647, %v169_v30  ;;  %vm175_vm4 = vweird.f32 %v169_v30 }
 0x22a   :  { %v182_v38 = vor.u32 1.1754944e-38, %v181_v34  ;;  %vm180_vm6 = vcmp.eq.f32.partialorder %v179_v36, 8.507059e+37 }
 0x22e   :  { %v216_v31 = vpop.eup %215 }
 0x22f   :  { %v171_v32 = vmul.f32 %v216_v31, %v169_v30  ;;  %vm176_vm3 = vweird.f32 %v216_v31 }
 0x230   :  { %vm177_vm5 = vmor %vm175_vm4, %vm176_vm3 }
 0x231   :  { %v172_v33 = vsub.f32 1.0, %v171_v32 }
 0x233   :  { %v173_v35 = vmul.f32 %v216_v31, %v172_v33 }
 0x235   :  { %v174_v37 = vadd.f32 %v216_v31, %v173_v35 }
 0x237   :  { %v178_v39 = vsel %vm177_vm5, %v216_v31, %v174_v37 }
 0x238   :  { %v183_v40 = vsel %vm180_vm6, %v182_v38, %v178_v39 }
 0x239   :  { %v185_v41 = vmul.f32 4.0, %v183_v40 }
 0x23b   :  { %v186_v42 = vadd.f32 -2.0, %v185_v41 }
 0x23d   :  { %187 = vst [vmem:[#allocation3] sm:$0x1] %v186_v42 }
 0x23e   :  { %198 = dma.vmem_to_hbm [thread:$0]  %s194_s7, 16, %s196_s22, [#allocation4]  }
 0x23f   :  { %241 = dma.done.wait [#allocation4], 16  }
 0x240   :  { %242 = vsyncadd [#allocation4], 4294967280 }
 0x241   :  { %203 = vsyncpa [#allocation4], 1 }

</bundles_post_ra>
